<compile_context>
chip_gen: v7x
topology: tpu7x:2x2x1
jax: 0.10.0
libtpu: 0.0.40
codegen_flags: <defaults>
</compile_context>

<pallas_src>
import jax
import jax.numpy as jnp
from jax.experimental import pallas as pl
from jax.experimental.pallas import tpu as pltpu

HIDDEN = 100
LANE = 128
SUBLANE = 8


def _round_up(n, m):
    return ((n + m - 1) // m) * m


def _pad2(a, rows, cols):
    r, c = a.shape
    return jnp.pad(a, ((0, rows - r), (0, cols - c)))


def mlp_kernel(x_ref,
               w1_ref, b1_ref,
               w2_ref, b2_ref,
               w3_ref, b3_ref,
               w4_ref, b4_ref,
               w5_ref, b5_ref,
               o_ref):
    """Fused MLP on one batch tile.

    Inputs / weights are bf16 MXU operands; accumulation is f32
    (preferred_element_type); bias add + ReLU are f32 (v5e-safe); the carried
    inter-layer activation is cast to bf16 exactly once per layer.
    """
    def dense(h_bf16, w_ref, b_ref):
        acc = jnp.dot(h_bf16, w_ref[...], preferred_element_type=jnp.float32)
        return acc + b_ref[...]                      # f32 bias add

    h = x_ref[...]                                   # bf16 [tile_b, in_dim]
    h = jnp.maximum(dense(h, w1_ref, b1_ref), 0.0).astype(jnp.bfloat16)
    h = jnp.maximum(dense(h, w2_ref, b2_ref), 0.0).astype(jnp.bfloat16)
    h = jnp.maximum(dense(h, w3_ref, b3_ref), 0.0).astype(jnp.bfloat16)
    h = jnp.maximum(dense(h, w4_ref, b4_ref), 0.0).astype(jnp.bfloat16)
    out = dense(h, w5_ref, b5_ref)                   # f32 [tile_b, out_p]
    # Narrow (lane-masked) store of only the real output columns.
    o_ref[...] = out[:, :o_ref.shape[-1]].astype(o_ref.dtype)


def network_forward(x, params, *, tile_b=None):
    """x: [B, input_dim] float32.  params: dict of (w, b) per layer."""
    B, in_dim = x.shape
    out_dim = params["w5"].shape[1]

    hid_p = _round_up(HIDDEN, LANE)   # 100 -> 128 (zero-padded, math-neutral)
    out_p = _round_up(out_dim, LANE)  # padded only for the last MXU tile

    if tile_b is None:
        # Multiple of 8 sublanes; up to 512 rows to amortize per-grid-step
        # overhead and fill the MXU M dimension (K=N=128 is fixed here).
        tile_b = min(512, _round_up(B, SUBLANE))
    tile_b = _round_up(tile_b, SUBLANE)
    Bp = _round_up(B, tile_b)
    grid = (Bp // tile_b,)

    # x: bf16, padded ONLY along batch.  Feature width stays at in_dim, which
    # is legal because the block's last dim equals the full array dim.
    xp = jnp.pad(x.astype(jnp.bfloat16), ((0, Bp - B), (0, 0)))

    # Layer-1 weight keeps its true fan-in (narrow-K first dot); only output
    # dims are padded to 128 lanes.  Padded rows/cols are zero -> results for
    # the real columns are unchanged and padded hidden columns stay exactly 0.
    fan_in_p = [in_dim, hid_p, hid_p, hid_p, hid_p]
    fan_out_p = [hid_p, hid_p, hid_p, hid_p, out_p]

    flat_params = []
    in_specs = [pl.BlockSpec((tile_b, in_dim), lambda i: (i, 0))]
    for idx in range(1, 6):
        wp = _pad2(params[f"w{idx}"], fan_in_p[idx - 1],
                   fan_out_p[idx - 1]).astype(jnp.bfloat16)
        bp = _pad2(params[f"b{idx}"], 1, fan_out_p[idx - 1]).astype(jnp.float32)
        flat_params += [wp, bp]
        # Grid-invariant (constant index_map) -> no re-DMA between grid steps.
        in_specs += [pl.BlockSpec(wp.shape, lambda i: (0, 0)),
                     pl.BlockSpec(bp.shape, lambda i: (0, 0))]

    out = pl.pallas_call(
        mlp_kernel,
        # True output width: lane-masked stores beat a 64x-inflated padded
        # writeback + an extra wrapper slice pass over HBM.
        out_shape=jax.ShapeDtypeStruct((Bp, out_dim), jnp.float32),
        grid_spec=pltpu.PrefetchScalarGridSpec(
            num_scalar_prefetch=0,
            grid=grid,
            in_specs=in_specs,
            out_specs=pl.BlockSpec((tile_b, out_dim), lambda i: (i, 0)),
        ),
        compiler_params=pltpu.CompilerParams(
            # Batch axis is fully independent; lets megacore / v7x dual-TC
            # shard it.  (If xprof shows one TC on v7x, switch to CORE_PARALLEL.)
            dimension_semantics=("parallel",),
        ),
    )(xp, *flat_params)

    return out[:B, :]


def init_params(key, input_dim, output_dim):
    """Deterministic init mimicking torch.nn.Linear default (uniform +/- 1/sqrt(fan_in))."""
    dims = [(input_dim, HIDDEN), (HIDDEN, HIDDEN), (HIDDEN, HIDDEN),
            (HIDDEN, HIDDEN), (HIDDEN, output_dim)]
    params = {}
    for idx, (fan_in, fan_out) in enumerate(dims, start=1):
        key, kw, kb = jax.random.split(key, 3)
        bound = 1.0 / jnp.sqrt(jnp.float32(fan_in))
        params[f"w{idx}"] = jax.random.uniform(
            kw, (fan_in, fan_out), jnp.float32, -bound, bound)
        # biases kept 2D (1, fan_out) so they broadcast cleanly in the kernel
        params[f"b{idx}"] = jax.random.uniform(
            kb, (1, fan_out), jnp.float32, -bound, bound)
    return params


def reference_forward(x, params):
    """Pure-JAX reference mirroring the kernel's contract:
    bf16 operands, f32 accumulation, f32 bias+ReLU, bf16 carried activation."""
    def dense(h, w, b):
        return jnp.dot(h.astype(jnp.bfloat16), w.astype(jnp.bfloat16),
                       preferred_element_type=jnp.float32) + b

    h = x
    for idx in range(1, 5):
        h = jnp.maximum(dense(h, params[f"w{idx}"], params[f"b{idx}"]),
                        0.0).astype(jnp.bfloat16)
    return dense(h, params["w5"], params["b5"])


if __name__ == "__main__":
    key = jax.random.PRNGKey(0)
    key, kx1, kx2 = jax.random.split(key, 3)

    input_dim = 4      # e.g. a small state vector
    output_dim = 2     # e.g. a small action-value head
    params = init_params(key, input_dim, output_dim)

    # Case 1: single-tile batch (B=8).  Note: at this size the call is pure
    # fixed overhead; tune/benchmark at realistic batch sizes.
    x1 = jax.random.normal(kx1, (8, input_dim), jnp.float32)
    out1 = jax.block_until_ready(network_forward(x1, params))
    ref1 = reference_forward(x1, params)
    assert out1.shape == (8, output_dim)
    assert jnp.allclose(out1, ref1, atol=2e-3, rtol=2e-3), "mismatch vs reference (B=8)"

    # Case 2: multi-tile grid with a batch remainder (B=20, tile_b=8 -> grid=3).
    x2 = jax.random.normal(kx2, (20, input_dim), jnp.float32)
    out2 = jax.block_until_ready(network_forward(x2, params, tile_b=8))
    ref2 = reference_forward(x2, params)
    assert out2.shape == (20, output_dim)
    assert jnp.allclose(out2, ref2, atol=2e-3, rtol=2e-3), "mismatch vs reference (B=20)"

    print("KERNEL_OK")
</pallas_src>

<mosaic_0001>
module attributes {stable_mosaic.version = 11 : i64} {
  func.func @mlp_kernel(%arg0: i32, %arg1: memref<8x4xbf16, #tpu.memory_space<vmem>>, %arg2: memref<4x128xbf16, #tpu.memory_space<vmem>>, %arg3: memref<1x128xf32, #tpu.memory_space<vmem>>, %arg4: memref<128x128xbf16, #tpu.memory_space<vmem>>, %arg5: memref<1x128xf32, #tpu.memory_space<vmem>>, %arg6: memref<128x128xbf16, #tpu.memory_space<vmem>>, %arg7: memref<1x128xf32, #tpu.memory_space<vmem>>, %arg8: memref<128x128xbf16, #tpu.memory_space<vmem>>, %arg9: memref<1x128xf32, #tpu.memory_space<vmem>>, %arg10: memref<128x128xbf16, #tpu.memory_space<vmem>>, %arg11: memref<1x128xf32, #tpu.memory_space<vmem>>, %arg12: memref<8x2xf32, #tpu.memory_space<vmem>>) attributes {dimension_semantics = [#tpu.dimension_semantics<parallel>], iteration_bounds = array<i64: 1>, scalar_prefetch = 0 : i64, scratch_operands = 0 : i64, tpu.core_type = #tpu.core_type<tc>, window_params = [{transform_indices = @transform_0, window_bounds = array<i64: 8, 4>}, {pipeline_mode = #tpu.pipeline_mode<synchronous>, transform_indices = @transform_1, window_bounds = array<i64: 4, 128>}, {pipeline_mode = #tpu.pipeline_mode<synchronous>, transform_indices = @transform_2, window_bounds = array<i64: 1, 128>}, {pipeline_mode = #tpu.pipeline_mode<synchronous>, transform_indices = @transform_3, window_bounds = array<i64: 128, 128>}, {pipeline_mode = #tpu.pipeline_mode<synchronous>, transform_indices = @transform_4, window_bounds = array<i64: 1, 128>}, {pipeline_mode = #tpu.pipeline_mode<synchronous>, transform_indices = @transform_5, window_bounds = array<i64: 128, 128>}, {pipeline_mode = #tpu.pipeline_mode<synchronous>, transform_indices = @transform_6, window_bounds = array<i64: 1, 128>}, {pipeline_mode = #tpu.pipeline_mode<synchronous>, transform_indices = @transform_7, window_bounds = array<i64: 128, 128>}, {pipeline_mode = #tpu.pipeline_mode<synchronous>, transform_indices = @transform_8, window_bounds = array<i64: 1, 128>}, {pipeline_mode = #tpu.pipeline_mode<synchronous>, transform_indices = @transform_9, window_bounds = array<i64: 128, 128>}, {pipeline_mode = #tpu.pipeline_mode<synchronous>, transform_indices = @transform_10, window_bounds = array<i64: 1, 128>}, {transform_indices = @transform_11, window_bounds = array<i64: 8, 2>}]} {
    %c0 = arith.constant 0 : index
    %c0_0 = arith.constant 0 : index
    %0 = vector.load %arg1[%c0, %c0_0] : memref<8x4xbf16, #tpu.memory_space<vmem>>, vector<8x4xbf16>
    %c0_1 = arith.constant 0 : index
    %c0_2 = arith.constant 0 : index
    %1 = vector.load %arg2[%c0_1, %c0_2] : memref<4x128xbf16, #tpu.memory_space<vmem>>, vector<4x128xbf16>
    %cst = arith.constant dense<0.000000e+00> : vector<8x128xf32>
    %2 = tpu.matmul %0, %1, %cst {dimension_numbers = #tpu.dot_dimension_numbers<[1], [0], [0], [1], [0, 0, 1, 1], [], []>} : vector<8x4xbf16>, vector<4x128xbf16>, vector<8x128xf32> -> vector<8x128xf32>
    %c0_3 = arith.constant 0 : index
    %c0_4 = arith.constant 0 : index
    %3 = vector.load %arg3[%c0_3, %c0_4] : memref<1x128xf32, #tpu.memory_space<vmem>>, vector<1x128xf32>
    %4 = vector.broadcast %3 : vector<1x128xf32> to vector<8x128xf32>
    %5 = arith.addf %2, %4 : vector<8x128xf32>
    %cst_5 = arith.constant 0.000000e+00 : f32
    %6 = vector.broadcast %cst_5 : f32 to vector<8x128xf32>
    %7 = arith.maximumf %5, %6 : vector<8x128xf32>
    %8 = arith.truncf %7 : vector<8x128xf32> to vector<8x128xbf16>
    %c0_6 = arith.constant 0 : index
    %c0_7 = arith.constant 0 : index
    %9 = vector.load %arg4[%c0_6, %c0_7] : memref<128x128xbf16, #tpu.memory_space<vmem>>, vector<128x128xbf16>
    %cst_8 = arith.constant dense<0.000000e+00> : vector<8x128xf32>
    %10 = tpu.matmul %8, %9, %cst_8 {dimension_numbers = #tpu.dot_dimension_numbers<[1], [0], [0], [1], [0, 0, 1, 1], [], []>} : vector<8x128xbf16>, vector<128x128xbf16>, vector<8x128xf32> -> vector<8x128xf32>
    %c0_9 = arith.constant 0 : index
    %c0_10 = arith.constant 0 : index
    %11 = vector.load %arg5[%c0_9, %c0_10] : memref<1x128xf32, #tpu.memory_space<vmem>>, vector<1x128xf32>
    %12 = vector.broadcast %11 : vector<1x128xf32> to vector<8x128xf32>
    %13 = arith.addf %10, %12 : vector<8x128xf32>
    %cst_11 = arith.constant 0.000000e+00 : f32
    %14 = vector.broadcast %cst_11 : f32 to vector<8x128xf32>
    %15 = arith.maximumf %13, %14 : vector<8x128xf32>
    %16 = arith.truncf %15 : vector<8x128xf32> to vector<8x128xbf16>
    %c0_12 = arith.constant 0 : index
    %c0_13 = arith.constant 0 : index
    %17 = vector.load %arg6[%c0_12, %c0_13] : memref<128x128xbf16, #tpu.memory_space<vmem>>, vector<128x128xbf16>
    %cst_14 = arith.constant dense<0.000000e+00> : vector<8x128xf32>
    %18 = tpu.matmul %16, %17, %cst_14 {dimension_numbers = #tpu.dot_dimension_numbers<[1], [0], [0], [1], [0, 0, 1, 1], [], []>} : vector<8x128xbf16>, vector<128x128xbf16>, vector<8x128xf32> -> vector<8x128xf32>
    %c0_15 = arith.constant 0 : index
    %c0_16 = arith.constant 0 : index
    %19 = vector.load %arg7[%c0_15, %c0_16] : memref<1x128xf32, #tpu.memory_space<vmem>>, vector<1x128xf32>
    %20 = vector.broadcast %19 : vector<1x128xf32> to vector<8x128xf32>
    %21 = arith.addf %18, %20 : vector<8x128xf32>
    %cst_17 = arith.constant 0.000000e+00 : f32
    %22 = vector.broadcast %cst_17 : f32 to vector<8x128xf32>
    %23 = arith.maximumf %21, %22 : vector<8x128xf32>
    %24 = arith.truncf %23 : vector<8x128xf32> to vector<8x128xbf16>
    %c0_18 = arith.constant 0 : index
    %c0_19 = arith.constant 0 : index
    %25 = vector.load %arg8[%c0_18, %c0_19] : memref<128x128xbf16, #tpu.memory_space<vmem>>, vector<128x128xbf16>
    %cst_20 = arith.constant dense<0.000000e+00> : vector<8x128xf32>
    %26 = tpu.matmul %24, %25, %cst_20 {dimension_numbers = #tpu.dot_dimension_numbers<[1], [0], [0], [1], [0, 0, 1, 1], [], []>} : vector<8x128xbf16>, vector<128x128xbf16>, vector<8x128xf32> -> vector<8x128xf32>
    %c0_21 = arith.constant 0 : index
    %c0_22 = arith.constant 0 : index
    %27 = vector.load %arg9[%c0_21, %c0_22] : memref<1x128xf32, #tpu.memory_space<vmem>>, vector<1x128xf32>
    %28 = vector.broadcast %27 : vector<1x128xf32> to vector<8x128xf32>
    %29 = arith.addf %26, %28 : vector<8x128xf32>
    %cst_23 = arith.constant 0.000000e+00 : f32
    %30 = vector.broadcast %cst_23 : f32 to vector<8x128xf32>
    %31 = arith.maximumf %29, %30 : vector<8x128xf32>
    %32 = arith.truncf %31 : vector<8x128xf32> to vector<8x128xbf16>
    %c0_24 = arith.constant 0 : index
    %c0_25 = arith.constant 0 : index
    %33 = vector.load %arg10[%c0_24, %c0_25] : memref<128x128xbf16, #tpu.memory_space<vmem>>, vector<128x128xbf16>
    %cst_26 = arith.constant dense<0.000000e+00> : vector<8x128xf32>
    %34 = tpu.matmul %32, %33, %cst_26 {dimension_numbers = #tpu.dot_dimension_numbers<[1], [0], [0], [1], [0, 0, 1, 1], [], []>} : vector<8x128xbf16>, vector<128x128xbf16>, vector<8x128xf32> -> vector<8x128xf32>
    %c0_27 = arith.constant 0 : index
    %c0_28 = arith.constant 0 : index
    %35 = vector.load %arg11[%c0_27, %c0_28] : memref<1x128xf32, #tpu.memory_space<vmem>>, vector<1x128xf32>
    %36 = vector.broadcast %35 : vector<1x128xf32> to vector<8x128xf32>
    %37 = arith.addf %34, %36 : vector<8x128xf32>
    %38 = vector.extract_strided_slice %37 {offsets = [0, 0], sizes = [8, 2], strides = [1, 1]} : vector<8x128xf32> to vector<8x2xf32>
    %c0_29 = arith.constant 0 : index
    %c0_30 = arith.constant 0 : index
    %39 = vector.load %arg12[%c0_29, %c0_30] : memref<8x2xf32, #tpu.memory_space<vmem>>, vector<8x2xf32>
    tpu.vector_store %arg12[%c0_29, %c0_30], %38 {strides = array<i32>} : memref<8x2xf32, #tpu.memory_space<vmem>>, vector<8x2xf32>,
    return
  }
  func.func @transform_0(%arg0: i32) -> (i32, i32) {
    %c0_i32 = arith.constant 0 : i32
    %c0_i32_0 = arith.constant 0 : i32
    return %arg0, %c0_i32 : i32, i32
  }
  func.func @transform_1(%arg0: i32) -> (i32, i32) {
    %c0_i32 = arith.constant 0 : i32
    %c0_i32_0 = arith.constant 0 : i32
    %c0_i32_1 = arith.constant 0 : i32
    return %c0_i32, %c0_i32_0 : i32, i32
  }
  func.func @transform_2(%arg0: i32) -> (i32, i32) {
    %c0_i32 = arith.constant 0 : i32
    %c0_i32_0 = arith.constant 0 : i32
    %c0_i32_1 = arith.constant 0 : i32
    return %c0_i32, %c0_i32_0 : i32, i32
  }
  func.func @transform_3(%arg0: i32) -> (i32, i32) {
    %c0_i32 = arith.constant 0 : i32
    %c0_i32_0 = arith.constant 0 : i32
    %c0_i32_1 = arith.constant 0 : i32
    return %c0_i32, %c0_i32_0 : i32, i32
  }
  func.func @transform_4(%arg0: i32) -> (i32, i32) {
    %c0_i32 = arith.constant 0 : i32
    %c0_i32_0 = arith.constant 0 : i32
    %c0_i32_1 = arith.constant 0 : i32
    return %c0_i32, %c0_i32_0 : i32, i32
  }
  func.func @transform_5(%arg0: i32) -> (i32, i32) {
    %c0_i32 = arith.constant 0 : i32
    %c0_i32_0 = arith.constant 0 : i32
    %c0_i32_1 = arith.constant 0 : i32
    return %c0_i32, %c0_i32_0 : i32, i32
  }
  func.func @transform_6(%arg0: i32) -> (i32, i32) {
    %c0_i32 = arith.constant 0 : i32
    %c0_i32_0 = arith.constant 0 : i32
    %c0_i32_1 = arith.constant 0 : i32
    return %c0_i32, %c0_i32_0 : i32, i32
  }
  func.func @transform_7(%arg0: i32) -> (i32, i32) {
    %c0_i32 = arith.constant 0 : i32
    %c0_i32_0 = arith.constant 0 : i32
    %c0_i32_1 = arith.constant 0 : i32
    return %c0_i32, %c0_i32_0 : i32, i32
  }
  func.func @transform_8(%arg0: i32) -> (i32, i32) {
    %c0_i32 = arith.constant 0 : i32
    %c0_i32_0 = arith.constant 0 : i32
    %c0_i32_1 = arith.constant 0 : i32
    return %c0_i32, %c0_i32_0 : i32, i32
  }
  func.func @transform_9(%arg0: i32) -> (i32, i32) {
    %c0_i32 = arith.constant 0 : i32
    %c0_i32_0 = arith.constant 0 : i32
    %c0_i32_1 = arith.constant 0 : i32
    return %c0_i32, %c0_i32_0 : i32, i32
  }
  func.func @transform_10(%arg0: i32) -> (i32, i32) {
    %c0_i32 = arith.constant 0 : i32
    %c0_i32_0 = arith.constant 0 : i32
    %c0_i32_1 = arith.constant 0 : i32
    return %c0_i32, %c0_i32_0 : i32, i32
  }
  func.func @transform_11(%arg0: i32) -> (i32, i32) {
    %c0_i32 = arith.constant 0 : i32
    %c0_i32_0 = arith.constant 0 : i32
    return %arg0, %c0_i32 : i32, i32
  }
}

</mosaic_0001>

<bundles_post_ra>
// kernel: tpu_custom_call.1
= control target key start
LH: loop header
LB: loop body
LE: loop exit
PB: predicated region body
PF: predicated region fallthrough
CT: control target
= control target key end

     0   :  { %16 = vsyncpa [#allocation3], 0  ;;  %s1117_s0 = inlined_call_operand.vmem [shape: bf16[8,4], index: 0, kind: input, shape index: {}]   ;;  %s1118_s1 = inlined_call_operand.vmem [shape: bf16[4,128], index: 1, kind: input, shape index: {}]   ;;  %s1119_s2 = inlined_call_operand.vmem [shape: f32[1,128], index: 2, kind: input, shape index: {}]   ;;  %s1120_s3 = inlined_call_operand.hbm [shape: bf16[128,128], index: 3, kind: input, shape index: {}]   ;;  %s1121_s4 = inlined_call_operand.vmem [shape: f32[1,128], index: 4, kind: input, shape index: {}]   ;;  %s1122_s5 = inlined_call_operand.hbm [shape: bf16[128,128], index: 5, kind: input, shape index: {}]   ;;  %s1123_s6 = inlined_call_operand.vmem [shape: f32[1,128], index: 6, kind: input, shape index: {}]   ;;  %s1124_s7 = inlined_call_operand.hbm [shape: bf16[128,128], index: 7, kind: input, shape index: {}]   ;;  %s1125_s8 = inlined_call_operand.vmem [shape: f32[1,128], index: 8, kind: input, shape index: {}]   ;;  %s1126_s9 = inlined_call_operand.hbm [shape: bf16[128,128], index: 9, kind: input, shape index: {}]   ;;  %s1127_s10 = inlined_call_operand.vmem [shape: f32[1,128], index: 10, kind: input, shape index: {}]   ;;  %s1128_s11 = inlined_call_operand.vmem [shape: f32[8,2], index: 11, kind: output, shape index: {}]  }
   0x1   :  { %17 = vsyncpa [#allocation5], 0 }
   0x2   :  { %18 = vsyncpa [#allocation8], 0  ;;  %s908_s17 = smov [#allocation4]   ;;  %s909_s19 = smov [#allocation2]  }
   0x3   :  { %s44_s18 = sshll.u32 %s908_s17, 4  ;;  %s30_s20 = sshll.u32 %s909_s19, 4  ;;  %s45_s18 = int_to_ptr.vmem [resolvable:$true] %s44_s18  ;;  %s976_s20 = int_to_ptr.vmem [resolvable:$true] %s30_s20 }
   0x4   :  { %s814_s23 = scalar_lea.hbm %s1122_s5, 1024 }
   0x5   :  { %p815_p0 = scmp.ne.s32.totalorder %s1122_s5, %s814_s23  ;;  %p818_p1 = scmp.lt.u32.totalorder %s814_s23, %s1122_s5 }
   0x7   :  { %p820_p2 = pnand %p818_p1, %p815_p0 }
   0x9   :  { %823 = shalt.err (!%p820_p2)
}
   0xa   :  { %s824_s28 = scalar_lea.vmem %s45_s18, 1024  ;;  %p829_p4 = scmp.lt.s32.totalorder %s45_s18, %s45_s18 }
   0xb   :  { %p825_p3 = scmp.ne.s32.totalorder %s45_s18, %s824_s28  ;;  %p830_p5 = scmp.lt.s32.totalorder %s824_s28, %s824_s28 }
   0xd   :  { %p831_p6 = por %p830_p5, %p829_p4 }
   0xf   :  { %p832_p7 = pnand %p831_p6, %p825_p3 }
  0x11   :  { %835 = shalt.err (!%p832_p7)
}
  0x12   :  { %s910_s29 = smov 64   ;;  %s911_s30 = smov 4  }
  0x13   :  { %50 = dma.hbm_to_vmem [thread:$0]  %s1122_s5, 1024, %s45_s18, [#allocation5], %s910_s29, %s910_s29, %s911_s30  }
  0x14   :  { %s836_s16 = scalar_lea.hbm %s1120_s3, 1024 }
  0x15   :  { %p837_p8 = scmp.ne.s32.totalorder %s1120_s3, %s836_s16  ;;  %p840_p9 = scmp.lt.u32.totalorder %s836_s16, %s1120_s3 }
  0x17   :  { %p842_p10 = pnand %p840_p9, %p837_p8 }
  0x19   :  { %845 = shalt.err (!%p842_p10)
}
  0x1a   :  { %s846_s23 = scalar_lea.vmem %s976_s20, 1024  ;;  %p851_p12 = scmp.lt.s32.totalorder %s976_s20, %s976_s20 }
  0x1b   :  { %p847_p11 = scmp.ne.s32.totalorder %s976_s20, %s846_s23  ;;  %p852_p13 = scmp.lt.s32.totalorder %s846_s23, %s846_s23 }
  0x1d   :  { %p853_p0 = por %p852_p13, %p851_p12 }
  0x1f   :  { %p854_p1 = pnand %p853_p0, %p847_p11 }
  0x21   :  { %857 = shalt.err (!%p854_p1)
}
  0x22   :  { %36 = dma.hbm_to_vmem [thread:$0]  %s1120_s3, 1024, %s976_s20, [#allocation3], %s910_s29, %s910_s29, %s911_s30  }
  0x23   :  { %s912_s24 = smov [#allocation6]   ;;  %s913_s26 = smov [#allocation7]  }
  0x24   :  { %s58_s25 = sshll.u32 %s912_s24, 4  ;;  %s72_s27 = sshll.u32 %s913_s26, 4  ;;  %s59_s25 = int_to_ptr.vmem [resolvable:$true] %s58_s25  ;;  %s1013_s27 = int_to_ptr.vmem [resolvable:$true] %s72_s27 }
  0x25   :  { %s858_s13 = scalar_lea.hbm %s1124_s7, 1024 }
  0x26   :  { %p859_p2 = scmp.ne.s32.totalorder %s1124_s7, %s858_s13  ;;  %p862_p3 = scmp.lt.u32.totalorder %s858_s13, %s1124_s7 }
  0x28   :  { %p864_p4 = pnand %p862_p3, %p859_p2 }
  0x2a   :  { %867 = shalt.err (!%p864_p4)
}
  0x2b   :  { %s868_s3 = scalar_lea.vmem %s59_s25, 1024  ;;  %p873_p6 = scmp.lt.s32.totalorder %s59_s25, %s59_s25 }
  0x2c   :  { %p869_p5 = scmp.ne.s32.totalorder %s59_s25, %s868_s3  ;;  %p874_p7 = scmp.lt.s32.totalorder %s868_s3, %s868_s3 }
  0x2e   :  { %p875_p8 = por %p874_p7, %p873_p6 }
  0x30   :  { %p876_p9 = pnand %p875_p8, %p869_p5 }
  0x32   :  { %879 = shalt.err (!%p876_p9)
}
  0x33   :  { %64 = dma.hbm_to_vmem [thread:$0]  %s1124_s7, 1024, %s59_s25, [#allocation5], %s910_s29, %s910_s29, %s911_s30  }
  0x34   :  { %s880_s23 = scalar_lea.hbm %s1126_s9, 1024 }
  0x35   :  { %p881_p10 = scmp.ne.s32.totalorder %s1126_s9, %s880_s23  ;;  %p884_p11 = scmp.lt.u32.totalorder %s880_s23, %s1126_s9 }
  0x37   :  { %p886_p12 = pnand %p884_p11, %p881_p10 }
  0x39   :  { %889 = shalt.err (!%p886_p12)
}
  0x3a   :  { %s890_s28 = scalar_lea.vmem %s1013_s27, 1024  ;;  %p895_p0 = scmp.lt.s32.totalorder %s1013_s27, %s1013_s27 }
  0x3b   :  { %p891_p13 = scmp.ne.s32.totalorder %s1013_s27, %s890_s28  ;;  %p896_p1 = scmp.lt.s32.totalorder %s890_s28, %s890_s28 }
  0x3d   :  { %p897_p2 = por %p896_p1, %p895_p0 }
  0x3f   :  { %p898_p3 = pnand %p897_p2, %p891_p13 }
  0x41   :  { %901 = shalt.err (!%p898_p3)
}
  0x42   :  { %78 = dma.hbm_to_vmem [thread:$0]  %s1126_s9, 1024, %s1013_s27, [#allocation8], %s910_s29, %s910_s29, %s911_s30  }
  0x43   :  { %902 = dma.done.wait [#allocation3], 1024  }
  0x44   :  { %903 = vsyncadd [#allocation3], 4294966272 }
  0x45   :  { %904 = dma.done.wait [#allocation5], 2048  }
  0x46   :  { %905 = vsyncadd [#allocation5], 4294965248 }
  0x47   :  { %906 = dma.done.wait [#allocation8], 1024  }
  0x48   :  { %907 = vsyncadd [#allocation8], 4294966272  ;;  %v914_v0 = vmov 0.0   ;;  %vm915_vm0 = vmmov 0   ;;  %vm107_vm1 = vcmask 1041408   ;;  %vm103_vm2 = vcmask 31744  }
  0x49   :  { %688 = vmatprep.subr.bf16.mxu0 %v914_v0  ;;  %690 = vmatprep.mubr.msk.bf16.mxu0 %vm915_vm0, %v914_v0  ;;  %v95_v1 = vld [vmem:[%s1118_s1] sm:$0x3]  ;;  %v783_v5 = vld [vmem:[#allocation2 + $0x8] sm:$0xff]   ;;  %v784_v6 = vld [vmem:[#allocation2 + $0x10] sm:$0xff]   ;;  %vm603_vm3 = vcmask 15360  }
  0x4a   :  { %694 = vmatprep.subr.bf16.mxu1 %v914_v0  ;;  %710 = vmatprep.mubr.msk.bf16.mxu1 %vm915_vm0, %v914_v0  ;;  %v109_v2 = vsel %vm107_vm1, %v95_v1, 0  ;;  %v782_v3 = vld [vmem:[#allocation2] sm:$0xff]   ;;  %v785_v7 = vld [vmem:[#allocation2 + $0x18] sm:$0xff]   ;;  %v787_v9 = vld [vmem:[#allocation2 + $0x28] sm:$0xff]  }
  0x4b   :  { %689 = vmatpush3.bf16.msra.mxu0 %v109_v2  ;;  %v94_v4 = vld [vmem:[%s1117_s0] sm:$0xf]  ;;  %695 = vmatpush3.bf16.msra.mxu1 %v782_v3  ;;  %v788_v10 = vld [vmem:[#allocation2 + $0x30] sm:$0xff]   ;;  %v789_v11 = vld [vmem:[#allocation2 + $0x38] sm:$0xff]  }
  0x4c   :  { %714 = vmatprep.subr.bf16.mxu0 %v914_v0  ;;  %696 = vmatprep.subr.bf16.mxu1 %v914_v0  ;;  %v786_v8 = vld [vmem:[#allocation2 + $0x20] sm:$0xff]   ;;  %v791_v13 = vld [vmem:[#allocation4 + $0x8] sm:$0xff]   ;;  %v792_v14 = vld [vmem:[#allocation4 + $0x10] sm:$0xff]  }
  0x4d   :  { %v790_v12 = vld [vmem:[#allocation4] sm:$0xff]   ;;  %v793_v15 = vld [vmem:[#allocation4 + $0x18] sm:$0xff]   ;;  %v795_v17 = vld [vmem:[#allocation4 + $0x28] sm:$0xff]  }
  0x4e   :  { %691 = vmatmul.mubr.msk.bf16.vlgmr.msra.gmra.mrb[0].mxu0 %vm103_vm2, %v94_v4  ;;  %v794_v16 = vld [vmem:[#allocation4 + $0x20] sm:$0xff]   ;;  %v796_v26 = vld [vmem:[#allocation4 + $0x30] sm:$0xff]   ;;  %v797_v27 = vld [vmem:[#allocation4 + $0x38] sm:$0xff]  }
  0x4f   :  { %730 = vmatprep.mubr.msk.bf16.mxu0 %vm915_vm0, %v914_v0  ;;  %697 = vmatpush3.bf16.msra.mxu1 %v783_v5  ;;  %v612_v18 = vld [vmem:[%s1119_s2] ss:$0 sm:$0xff]  ;;  %v799_v29 = vld [vmem:[#allocation6 + $0x8] sm:$0xff]   ;;  %v800_v30 = vld [vmem:[#allocation6 + $0x10] sm:$0xff]  }
  0x50   :  { %698 = vmatprep.subr.bf16.mxu1 %v914_v0  ;;  %715 = vmatpush3.bf16.msra.mxu0 %v790_v12  ;;  %v798_v28 = vld [vmem:[#allocation6] sm:$0xff]   ;;  %v801_v31 = vld [vmem:[#allocation6 + $0x18] sm:$0xff]   ;;  %v803_v33 = vld [vmem:[#allocation6 + $0x28] sm:$0xff]  }
  0x51   :  { %716 = vmatprep.subr.bf16.mxu0 %v914_v0  ;;  %v802_v32 = vld [vmem:[#allocation6 + $0x20] sm:$0xff]   ;;  %v804_v42 = vld [vmem:[#allocation6 + $0x30] sm:$0xff]   ;;  %v805_v43 = vld [vmem:[#allocation6 + $0x38] sm:$0xff]  }
  0x52   :  { %v614_v34 = vld [vmem:[%s1121_s4] ss:$0 sm:$0xff]  ;;  %v807_v45 = vld [vmem:[#allocation7 + $0x8] sm:$0xff]   ;;  %v808_v46 = vld [vmem:[#allocation7 + $0x10] sm:$0xff]  }
  0x53   :  { %699 = vmatpush3.bf16.msra.mxu1 %v784_v6  ;;  %v806_v44 = vld [vmem:[#allocation7] sm:$0xff]   ;;  %v809_v47 = vld [vmem:[#allocation7 + $0x18] sm:$0xff]   ;;  %v811_v49 = vld [vmem:[#allocation7 + $0x28] sm:$0xff]  }
  0x54   :  { %700 = vmatprep.subr.bf16.mxu1 %v914_v0  ;;  %717 = vmatpush3.bf16.msra.mxu0 %v791_v13  ;;  %v810_v48 = vld [vmem:[#allocation7 + $0x20] sm:$0xff]   ;;  %v812_v58 = vld [vmem:[#allocation7 + $0x30] sm:$0xff]   ;;  %v813_v59 = vld [vmem:[#allocation7 + $0x38] sm:$0xff]  }
  0x55   :  { %718 = vmatprep.subr.bf16.mxu0 %v914_v0  ;;  %v623_v50 = vld [vmem:[%s1123_s6] ss:$0 sm:$0xff] }
  0x56   :  { %v632_v60 = vld [vmem:[%s1125_s8] ss:$0 sm:$0xff] }
  0x57   :  { %701 = vmatpush3.bf16.msra.mxu1 %v785_v7  ;;  %v641_v5 = vld [vmem:[%s1127_s10] ss:$0 sm:$0xff] }
  0x58   :  { %702 = vmatprep.subr.bf16.mxu1 %v914_v0  ;;  %719 = vmatpush3.bf16.msra.mxu0 %v792_v14 }
  0x59   :  { %720 = vmatprep.subr.bf16.mxu0 %v914_v0 }
  0x5b   :  { %703 = vmatpush3.bf16.msra.mxu1 %v786_v8 }
  0x5c   :  { %704 = vmatprep.subr.bf16.mxu1 %v914_v0  ;;  %721 = vmatpush3.bf16.msra.mxu0 %v793_v15 }
  0x5d   :  { %722 = vmatprep.subr.bf16.mxu0 %v914_v0 }
  0x5f   :  { %705 = vmatpush3.bf16.msra.mxu1 %v787_v9 }
  0x60   :  { %706 = vmatprep.subr.bf16.mxu1 %v914_v0  ;;  %723 = vmatpush3.bf16.msra.mxu0 %v794_v16 }
  0x61   :  { %724 = vmatprep.subr.bf16.mxu0 %v914_v0 }
  0x63   :  { %707 = vmatpush3.bf16.msra.mxu1 %v788_v10 }
  0x64   :  { %708 = vmatprep.subr.bf16.mxu1 %v914_v0  ;;  %725 = vmatpush3.bf16.msra.mxu0 %v795_v17 }
  0x65   :  { %726 = vmatprep.subr.bf16.mxu0 %v914_v0 }
  0x67   :  { %709 = vmatpush3.bf16.msra.mxu1 %v789_v11 }
  0x68   :  { %734 = vmatprep.subr.bf16.mxu1 %v914_v0  ;;  %727 = vmatpush3.bf16.msra.mxu0 %v796_v26 }
  0x69   :  { %728 = vmatprep.subr.bf16.mxu0 %v914_v0 }
  0x6c   :  { %729 = vmatpush3.bf16.msra.mxu0 %v797_v27 }
  0x6d   :  { %754 = vmatprep.subr.bf16.mxu0 %v914_v0 }
 0x121   :  { %v145_v19 = vpop.f32.mrb[0].mxu0 }
 0x122   :  { %v146_v20 = vadd.f32 %v612_v18, %v145_v19  ;;  %v692_v21 = vpop.f32.mrb[1].mxu0 }
 0x123   :  { %v148_v22 = vpop.f32.mrb[2].mxu0 }
 0x124   :  { %v151_v23 = vmax.f32 %v146_v20, 0.0  ;;  %v693_v24 = vpop.f32.mrb[3].mxu0 }
 0x126   :  { %v152_v25 = vpack.c.bf16 %v151_v23, %v151_v23 }
 0x128   :  { %711 = vmatmul.mubr.bf16.vlgmr.msra.gmra.mrb[0].mxu1 %v152_v25 }
 0x129   :  { %750 = vmatprep.mubr.msk.bf16.mxu1 %vm915_vm0, %v914_v0  ;;  %735 = vmatpush3.bf16.msra.mxu1 %v798_v28 }
 0x12a   :  { %736 = vmatprep.subr.bf16.mxu1 %v914_v0 }
 0x12d   :  { %737 = vmatpush3.bf16.msra.mxu1 %v799_v29 }
 0x12e   :  { %738 = vmatprep.subr.bf16.mxu1 %v914_v0 }
 0x131   :  { %739 = vmatpush3.bf16.msra.mxu1 %v800_v30 }
 0x132   :  { %740 = vmatprep.subr.bf16.mxu1 %v914_v0 }
 0x135   :  { %741 = vmatpush3.bf16.msra.mxu1 %v801_v31 }
 0x136   :  { %742 = vmatprep.subr.bf16.mxu1 %v914_v0 }
 0x139   :  { %743 = vmatpush3.bf16.msra.mxu1 %v802_v32 }
 0x13a   :  { %744 = vmatprep.subr.bf16.mxu1 %v914_v0 }
 0x13d   :  { %745 = vmatpush3.bf16.msra.mxu1 %v803_v33 }
 0x13e   :  { %746 = vmatprep.subr.bf16.mxu1 %v914_v0 }
 0x141   :  { %747 = vmatpush3.bf16.msra.mxu1 %v804_v42 }
 0x142   :  { %748 = vmatprep.subr.bf16.mxu1 %v914_v0 }
 0x145   :  { %749 = vmatpush3.bf16.msra.mxu1 %v805_v43 }
 0x1fb   :  { %v258_v35 = vpop.f32.mrb[0].mxu1 }
 0x1fc   :  { %v259_v36 = vadd.f32 %v614_v34, %v258_v35  ;;  %v712_v37 = vpop.f32.mrb[1].mxu1 }
 0x1fd   :  { %v261_v38 = vpop.f32.mrb[2].mxu1 }
 0x1fe   :  { %v264_v39 = vmax.f32 %v259_v36, 0.0  ;;  %v713_v40 = vpop.f32.mrb[3].mxu1 }
 0x200   :  { %v265_v41 = vpack.c.bf16 %v264_v39, %v264_v39 }
 0x202   :  { %731 = vmatmul.mubr.bf16.vlgmr.msra.gmra.mrb[4].mxu0 %v265_v41 }
 0x203   :  { %770 = vmatprep.mubr.msk.bf16.mxu0 %vm915_vm0, %v914_v0  ;;  %755 = vmatpush3.bf16.msra.mxu0 %v806_v44 }
 0x204   :  { %756 = vmatprep.subr.bf16.mxu0 %v914_v0 }
 0x207   :  { %757 = vmatpush3.bf16.msra.mxu0 %v807_v45 }
 0x208   :  { %758 = vmatprep.subr.bf16.mxu0 %v914_v0 }
 0x20b   :  { %759 = vmatpush3.bf16.msra.mxu0 %v808_v46 }
 0x20c   :  { %760 = vmatprep.subr.bf16.mxu0 %v914_v0 }
 0x20f   :  { %761 = vmatpush3.bf16.msra.mxu0 %v809_v47 }
 0x210   :  { %762 = vmatprep.subr.bf16.mxu0 %v914_v0 }
 0x213   :  { %763 = vmatpush3.bf16.msra.mxu0 %v810_v48 }
 0x214   :  { %764 = vmatprep.subr.bf16.mxu0 %v914_v0 }
 0x217   :  { %765 = vmatpush3.bf16.msra.mxu0 %v811_v49 }
 0x218   :  { %766 = vmatprep.subr.bf16.mxu0 %v914_v0 }
 0x21b   :  { %767 = vmatpush3.bf16.msra.mxu0 %v812_v58 }
 0x21c   :  { %768 = vmatprep.subr.bf16.mxu0 %v914_v0 }
 0x21f   :  { %769 = vmatpush3.bf16.msra.mxu0 %v813_v59 }
 0x2d5   :  { %v371_v51 = vpop.f32.mrb[4].mxu0 }
 0x2d6   :  { %v372_v52 = vadd.f32 %v623_v50, %v371_v51  ;;  %v732_v53 = vpop.f32.mrb[5].mxu0 }
 0x2d7   :  { %v374_v54 = vpop.f32.mrb[6].mxu0 }
 0x2d8   :  { %v377_v55 = vmax.f32 %v372_v52, 0.0  ;;  %v733_v56 = vpop.f32.mrb[7].mxu0 }
 0x2da   :  { %v378_v57 = vpack.c.bf16 %v377_v55, %v377_v55 }
 0x2dc   :  { %751 = vmatmul.mubr.bf16.vlgmr.msra.gmra.mrb[4].mxu1 %v378_v57 }
 0x3af   :  { %v484_v61 = vpop.f32.mrb[4].mxu1 }
 0x3b0   :  { %v485_v62 = vadd.f32 %v632_v60, %v484_v61  ;;  %v752_v63 = vpop.f32.mrb[5].mxu1 }
 0x3b1   :  { %v487_v1 = vpop.f32.mrb[6].mxu1 }
 0x3b2   :  { %v490_v2 = vmax.f32 %v485_v62, 0.0  ;;  %v753_v3 = vpop.f32.mrb[7].mxu1 }
 0x3b4   :  { %v491_v4 = vpack.c.bf16 %v490_v2, %v490_v2 }
 0x3b6   :  { %771 = vmatmul.mubr.bf16.vlgmr.msra.gmra.mrb[8].mxu0 %v491_v4 }
 0x489   :  { %v597_v6 = vpop.f32.mrb[8].mxu0 }
 0x48a   :  { %v598_v0 = vadd.f32 %v641_v5, %v597_v6  ;;  %v772_v7 = vpop.f32.mrb[9].mxu0 }
 0x48b   :  { %v600_v8 = vpop.f32.mrb[10].mxu0 }
 0x48c   :  { %604 = vst.msk [vmem:[%s1128_s11] sm:$0xff] %vm603_vm3, %v598_v0  ;;  %v773_v9 = vpop.f32.mrb[11].mxu0 }
 0x48d   :  { %609 = vsyncpa [#allocation3], 1 }
 0x48e   :  { %610 = vsyncpa [#allocation5], 1 }
 0x48f   :  { %611 = vsyncpa [#allocation8], 1 }

</bundles_post_ra>
